<compile_context>
chip_gen: v6e
topology: v6e:2x2x1
jax: 0.10.0
libtpu: 0.0.40
codegen_flags: <defaults>
</compile_context>

<pallas_src>
import functools

import jax
import jax.numpy as jnp
from jax import lax
from jax.experimental import pallas as pl
from jax.experimental.pallas import tpu as pltpu


_NEG_BIG = -1e30  # finite "minus infinity" (avoids inf-inf / NaN on padded lanes)


def _round_up(x: int, m: int) -> int:
    return ((x + m - 1) // m) * m


def _ce_tiled_kernel(logits_ref, targets_ref, out_ref,
                     m_sc, s_sc, p_sc, *,
                     num_rows: int, num_classes: int, ignore_index: int):
    """One (batch_tile, class_tile) step of masked cross-entropy.

    logits_ref : (tb, tc) float (native dtype, upcast to f32 here)
    targets_ref: (tb, 1)  int32
    out_ref    : (1, 1, 128) f32  lane0 = sum(nll*valid), lane1 = sum(valid)
                 (written only at the last class tile)
    scratch    : m_sc / s_sc / p_sc : (tb, 1) f32 running max / sum-exp / picked
    """
    i = pl.program_id(0)
    k = pl.program_id(1)
    nk = pl.num_programs(1)

    @pl.when(k == 0)
    def _():
        m_sc[...] = jnp.full_like(m_sc, _NEG_BIG)
        s_sc[...] = jnp.zeros_like(s_sc)
        p_sc[...] = jnp.zeros_like(p_sc)

    logits = logits_ref[...].astype(jnp.float32)            # (tb, tc) f32
    tgt = targets_ref[...]                                   # (tb, 1) int32
    tb, tc = logits.shape

    col_local = lax.broadcasted_iota(jnp.int32, (tb, tc), 1)
    row_local = lax.broadcasted_iota(jnp.int32, (tb, 1), 0)

    # Ragged-edge masks (no host-side padding): applied in f32 and BEFORE the
    # per-tile max so out-of-bounds garbage never reaches the running stats.
    row_valid = (i * tb + row_local) < num_rows              # (tb, 1) bool
    col_valid = col_local < (num_classes - k * tc)           # (tb, tc) bool
    logits = jnp.where(row_valid, logits, 0.0)               # OOB rows -> 0
    logits = jnp.where(col_valid, logits, _NEG_BIG)          # OOB cols -> -inf

    # online log-sum-exp update
    m_tile = jnp.max(logits, axis=-1, keepdims=True)         # (tb, 1)
    m_new = jnp.maximum(m_sc[...], m_tile)
    s_sc[...] = s_sc[...] * jnp.exp(m_sc[...] - m_new) + jnp.sum(
        jnp.exp(logits - m_new), axis=-1, keepdims=True)
    m_sc[...] = m_new

    # gather logits[b, tgt[b]] via local-index compare (one (tb,1) subtract
    # instead of a full (tb,tc) int add per step)
    tgt_local = tgt - k * tc
    p_sc[...] = p_sc[...] + jnp.sum(
        jnp.where(col_local == tgt_local, logits, 0.0), axis=-1, keepdims=True)

    @pl.when(k == nk - 1)
    def _():
        lse = m_sc[...] + jnp.log(s_sc[...])                  # (tb, 1)
        valid = jnp.logical_and(row_valid, tgt != ignore_index)
        validf = valid.astype(jnp.float32)                    # (tb, 1)
        nll_sum = jnp.sum((lse - p_sc[...]) * validf)         # scalar
        cnt_sum = jnp.sum(validf)                             # scalar
        lane = lax.broadcasted_iota(jnp.int32, out_ref.shape, 2)
        out_ref[...] = (jnp.where(lane == 0, nll_sum, 0.0)
                        + jnp.where(lane == 1, cnt_sum, 0.0))


def cross_entropy_pallas(logits, targets, ignore_index: int = -100, *,
                         max_tb: int = 512, max_tc: int = None,
                         target_block_bytes: int = 4 * 1024 * 1024):
    """nn.CrossEntropyLoss(ignore_index=..., reduction='mean') for 2-D logits."""
    logits = jnp.asarray(logits)
    if logits.dtype in (jnp.float32, jnp.bfloat16):
        pass
    elif jnp.issubdtype(logits.dtype, jnp.floating):
        logits = logits.astype(jnp.bfloat16)      # keep HBM reads half-width
    else:
        logits = logits.astype(jnp.float32)
    B, C = logits.shape
    targets = jnp.asarray(targets).astype(jnp.int32).reshape(B, 1)

    itemsize = jnp.dtype(logits.dtype).itemsize
    sub = 16 if logits.dtype == jnp.bfloat16 else 8   # sublane granularity

    # batch tile: <= max_tb, and >=2 tiles when possible so the "parallel"
    # axis shards across both TensorCores (v7x megacore).
    b_ceil = _round_up(B, sub)
    tb = min(max_tb, b_ceil)
    if tb == b_ceil and B > sub:
        tb = _round_up(-(-B // 2), sub)

    # class tile: byte-constant budget (bf16 gets 2x the lane width of f32)
    c_ceil = _round_up(C, 128)
    if max_tc is None:
        max_tc = max(128, (target_block_bytes // (tb * itemsize)) // 128 * 128)
    tc = min(max_tc, c_ceil)

    nb = pl.cdiv(B, tb)
    nc = pl.cdiv(C, tc)

    out = pl.pallas_call(
        functools.partial(_ce_tiled_kernel, num_rows=B, num_classes=C,
                          ignore_index=ignore_index),
        out_shape=jax.ShapeDtypeStruct((nb, 1, 128), jnp.float32),
        grid_spec=pltpu.PrefetchScalarGridSpec(
            num_scalar_prefetch=0,
            grid=(nb, nc),
            in_specs=[
                pl.BlockSpec((tb, tc), lambda i, k: (i, k)),
                pl.BlockSpec((tb, 1), lambda i, k: (i, 0)),
            ],
            out_specs=pl.BlockSpec((1, 1, 128), lambda i, k: (i, 0, 0)),
            scratch_shapes=[
                pltpu.VMEM((tb, 1), jnp.float32),   # running max
                pltpu.VMEM((tb, 1), jnp.float32),   # running sum-exp
                pltpu.VMEM((tb, 1), jnp.float32),   # running picked logit
            ],
        ),
        compiler_params=pltpu.CompilerParams(
            dimension_semantics=("parallel", "arbitrary"),
            vmem_limit_bytes=48 * 1024 * 1024,
        ),
    )(logits, targets)

    nll_total = jnp.sum(out[:, 0, 0])
    cnt_total = jnp.sum(out[:, 0, 1])
    # mean over non-ignored rows; 0/0 -> NaN matches PyTorch when all ignored
    return nll_total / cnt_total


class FixedTaskSpecificLossPallas:
    """JAX/Pallas port of FixedTaskSpecificLoss (forward only, no parameters)."""

    def __init__(self, task_name: str, weight: float = 1.0):
        self.task_name = task_name
        self.weight = float(weight)
        # nn.CrossEntropyLoss default ignore_index is -100 (also explicit for
        # summarization / code_generation / translation); QA uses -1.
        self._ignore_index = -1 if task_name == "qa" else -100

    def _qa_loss(self, predictions, targets):
        # dispatch mirrors the original module
        if isinstance(predictions, tuple) and len(predictions) == 2:
            start_logits = jnp.asarray(predictions[0])
            end_logits = jnp.asarray(predictions[1])
            Bq, S = start_logits.shape
            combined_logits = jnp.concatenate([start_logits, end_logits], axis=0)
        else:
            predictions = jnp.asarray(predictions)
            if predictions.ndim == 3 and predictions.shape[-1] == 2:
                Bq, S = predictions.shape[0], predictions.shape[1]
                # (B,S,2) -> (2,B,S) -> (2B,S): one fused transpose copy.
                # TODO(synk): for very long sequences, read the (B,S,2) layout
                # directly with a strided/3-D BlockSpec to avoid this copy.
                combined_logits = jnp.moveaxis(predictions, -1, 0).reshape(2 * Bq, S)
            else:
                Bq = predictions.shape[0]
                S = predictions.shape[1] // 2
                combined_logits = jnp.concatenate(
                    [predictions[:, :S], predictions[:, S:]], axis=0)

        targets = jnp.asarray(targets)
        if targets.ndim == 1:
            targets = jnp.broadcast_to(targets[None, :], (Bq, targets.shape[0]))

        start_pos = jnp.clip(targets[:, 0].astype(jnp.int32), 0, S - 1)
        end_pos = jnp.clip(targets[:, 1].astype(jnp.int32), 0, S - 1)

        # Single CE over concatenated (2B, S) rows == (start_loss+end_loss)/2:
        # after clamping, both halves have exactly B valid rows, so the mean
        # over 2B rows equals the average of the two per-half means.
        combined_targets = jnp.concatenate([start_pos, end_pos], axis=0)
        return cross_entropy_pallas(combined_logits, combined_targets,
                                    ignore_index=self._ignore_index)

    def __call__(self, predictions, targets):
        if self.task_name == "qa":
            loss = self._qa_loss(predictions, targets)
        else:
            loss = cross_entropy_pallas(
                jnp.asarray(predictions), jnp.asarray(targets),
                ignore_index=self._ignore_index)
        return self.weight * loss


# ----------------------------- reference & test ------------------------------

def _reference_ce(logits, targets, ignore_index):
    logits = jnp.asarray(logits, jnp.float32)
    targets = jnp.asarray(targets, jnp.int32)
    logp = jax.nn.log_softmax(logits, axis=-1)
    safe_t = jnp.where(targets == ignore_index, 0, targets)
    nll = -jnp.take_along_axis(logp, safe_t[:, None], axis=-1)[:, 0]
    mask = (targets != ignore_index).astype(jnp.float32)
    return jnp.sum(nll * mask) / jnp.sum(mask)


if __name__ == "__main__":
    key = jax.random.PRNGKey(0)
    k1, k2, k3, k4, k5, k6 = jax.random.split(key, 6)

    # ---- sentiment task: logits (batch=8, num_classes=4), class targets
    B, C = 8, 4
    sent_logits = jax.random.normal(k1, (B, C), dtype=jnp.float32)
    sent_targets = jax.random.randint(k2, (B,), 0, C, dtype=jnp.int32)

    sent_mod = FixedTaskSpecificLossPallas("sentiment", weight=1.0)
    sent_loss = jax.block_until_ready(sent_mod(sent_logits, sent_targets))
    sent_ref = _reference_ce(sent_logits, sent_targets, ignore_index=-100)
    assert jnp.allclose(sent_loss, sent_ref, atol=1e-4, rtol=1e-4), (sent_loss, sent_ref)

    # ---- same task with bf16 logits (native half-width HBM ingest path)
    sent_logits_bf16 = sent_logits.astype(jnp.bfloat16)
    sent_loss_bf16 = jax.block_until_ready(sent_mod(sent_logits_bf16, sent_targets))
    sent_ref_bf16 = _reference_ce(sent_logits_bf16.astype(jnp.float32),
                                  sent_targets, ignore_index=-100)
    assert jnp.allclose(sent_loss_bf16, sent_ref_bf16, atol=1e-3, rtol=1e-3), (
        sent_loss_bf16, sent_ref_bf16)

    # ---- qa task: predictions (batch=2, seq=8, 2), targets (batch, 2)
    Bq, S = 2, 8
    qa_preds = jax.random.normal(k3, (Bq, S, 2), dtype=jnp.float32)
    qa_targets = jax.random.randint(k4, (Bq, 2), 0, S, dtype=jnp.int32)

    qa_mod = FixedTaskSpecificLossPallas("qa", weight=2.0)
    qa_loss = jax.block_until_ready(qa_mod(qa_preds, qa_targets))
    start_ref = _reference_ce(qa_preds[:, :, 0], jnp.clip(qa_targets[:, 0], 0, S - 1), -1)
    end_ref = _reference_ce(qa_preds[:, :, 1], jnp.clip(qa_targets[:, 1], 0, S - 1), -1)
    qa_ref = 2.0 * (start_ref + end_ref) * 0.5
    assert jnp.allclose(qa_loss, qa_ref, atol=1e-4, rtol=1e-4), (qa_loss, qa_ref)

    # ---- translation-style case exercising the ragged multi-tile grid + the
    #      ignore mask: tiny tile caps force a (3 batch-tile x 3 class-tile)
    #      grid with partial edge blocks in both dimensions (no host padding).
    Bt, Ct = 23, 300
    tr_logits = jax.random.normal(k5, (Bt, Ct), dtype=jnp.float32)
    tr_targets = jax.random.randint(k6, (Bt,), 0, Ct, dtype=jnp.int32)
    tr_targets = tr_targets.at[::5].set(-100)      # some ignored rows
    tr_loss = jax.block_until_ready(
        cross_entropy_pallas(tr_logits, tr_targets, ignore_index=-100,
                             max_tb=8, max_tc=128))
    tr_ref = _reference_ce(tr_logits, tr_targets, ignore_index=-100)
    assert jnp.allclose(tr_loss, tr_ref, atol=1e-4, rtol=1e-4), (tr_loss, tr_ref)

    # ---- same data with default tiling: exercises the 2-batch-tile split
    #      heuristic (megacore) and single ragged class tile.
    tr_loss_def = jax.block_until_ready(
        cross_entropy_pallas(tr_logits, tr_targets, ignore_index=-100))
    assert jnp.allclose(tr_loss_def, tr_ref, atol=1e-4, rtol=1e-4), (tr_loss_def, tr_ref)

    print("KERNEL_OK")
</pallas_src>

<mosaic_0001>
module attributes {stable_mosaic.version = 11 : i64} {
  func.func @_ce_tiled_kernel(%arg0: i32, %arg1: i32, %arg2: memref<8x128xf32, #tpu.memory_space<vmem>>, %arg3: memref<8x1xi32, #tpu.memory_space<vmem>>, %arg4: memref<1x1x128xf32, #tpu.memory_space<vmem>>, %arg5: memref<8x1xf32, #tpu.memory_space<vmem>>, %arg6: memref<8x1xf32, #tpu.memory_space<vmem>>, %arg7: memref<8x1xf32, #tpu.memory_space<vmem>>) attributes {dimension_semantics = [#tpu.dimension_semantics<parallel>, #tpu.dimension_semantics<arbitrary>], iteration_bounds = array<i64: 1, 1>, scalar_prefetch = 0 : i64, scratch_operands = 3 : i64, tpu.core_type = #tpu.core_type<tc>, window_params = [{transform_indices = @transform_0, window_bounds = array<i64: 8, 128>}, {transform_indices = @transform_1, window_bounds = array<i64: 8, 1>}, {transform_indices = @transform_2, window_bounds = array<i64: 1, 1, 128>}]} {
    %c0_i32 = arith.constant 0 : i32
    %0 = arith.cmpi eq, %arg1, %c0_i32 : i32
    %1 = arith.extui %0 : i1 to i32
    %c0_i32_0 = arith.constant 0 : i32
    %2 = arith.cmpi ne, %1, %c0_i32_0 : i32
    scf.if %2 {
      %cst_27 = arith.constant -1.000000e+30 : f32
      %54 = vector.broadcast %cst_27 : f32 to vector<8x1xf32>
      %c0_28 = arith.constant 0 : index
      %c0_29 = arith.constant 0 : index
      %55 = vector.load %arg5[%c0_28, %c0_29] : memref<8x1xf32, #tpu.memory_space<vmem>>, vector<8x1xf32>
      tpu.vector_store %arg5[%c0_28, %c0_29], %54 {strides = array<i32>} : memref<8x1xf32, #tpu.memory_space<vmem>>, vector<8x1xf32>,
      %cst_30 = arith.constant 0.000000e+00 : f32
      %56 = vector.broadcast %cst_30 : f32 to vector<8x1xf32>
      %c0_31 = arith.constant 0 : index
      %c0_32 = arith.constant 0 : index
      %57 = vector.load %arg6[%c0_31, %c0_32] : memref<8x1xf32, #tpu.memory_space<vmem>>, vector<8x1xf32>
      tpu.vector_store %arg6[%c0_31, %c0_32], %56 {strides = array<i32>} : memref<8x1xf32, #tpu.memory_space<vmem>>, vector<8x1xf32>,
      %cst_33 = arith.constant 0.000000e+00 : f32
      %58 = vector.broadcast %cst_33 : f32 to vector<8x1xf32>
      %c0_34 = arith.constant 0 : index
      %c0_35 = arith.constant 0 : index
      %59 = vector.load %arg7[%c0_34, %c0_35] : memref<8x1xf32, #tpu.memory_space<vmem>>, vector<8x1xf32>
      tpu.vector_store %arg7[%c0_34, %c0_35], %58 {strides = array<i32>} : memref<8x1xf32, #tpu.memory_space<vmem>>, vector<8x1xf32>,
    } else {
    }
    %c0 = arith.constant 0 : index
    %c0_1 = arith.constant 0 : index
    %3 = vector.load %arg2[%c0, %c0_1] : memref<8x128xf32, #tpu.memory_space<vmem>>, vector<8x128xf32>
    %c0_2 = arith.constant 0 : index
    %c0_3 = arith.constant 0 : index
    %4 = vector.load %arg3[%c0_2, %c0_3] : memref<8x1xi32, #tpu.memory_space<vmem>>, vector<8x1xi32>
    %5 = tpu.iota {dimensions = array<i32: 1>} : vector<8x128xi32>
    %6 = tpu.iota {dimensions = array<i32: 0>} : vector<8x1xi32>
    %c8_i32 = arith.constant 8 : i32
    %7 = arith.muli %arg0, %c8_i32 : i32
    %8 = vector.broadcast %7 : i32 to vector<8x1xi32>
    %9 = arith.addi %8, %6 : vector<8x1xi32>
    %c8_i32_4 = arith.constant 8 : i32
    %10 = vector.broadcast %c8_i32_4 : i32 to vector<8x1xi32>
    %11 = arith.cmpi slt, %9, %10 : vector<8x1xi32>
    %c128_i32 = arith.constant 128 : i32
    %12 = arith.muli %arg1, %c128_i32 : i32
    %c4_i32 = arith.constant 4 : i32
    %13 = arith.subi %c4_i32, %12 : i32
    %14 = vector.broadcast %13 : i32 to vector<8x128xi32>
    %15 = arith.cmpi slt, %5, %14 : vector<8x128xi32>
    %cst = arith.constant 0.000000e+00 : f32
    %16 = vector.shape_cast %11 : vector<8x1xi1> to vector<8x1xi1>
    %17 = vector.broadcast %16 : vector<8x1xi1> to vector<8x128xi1>
    %18 = vector.broadcast %cst : f32 to vector<8x128xf32>
    %19 = arith.select %17, %3, %18 : vector<8x128xi1>, vector<8x128xf32>
    %cst_5 = arith.constant -1.000000e+30 : f32
    %20 = vector.broadcast %cst_5 : f32 to vector<8x128xf32>
    %21 = arith.select %15, %19, %20 : vector<8x128xi1>, vector<8x128xf32>
    %cst_6 = arith.constant dense<0xFF800000> : vector<8xf32>
    %22 = vector.multi_reduction <maximumf>, %21, %cst_6 [1] : vector<8x128xf32> to vector<8xf32>
    %23 = vector.shape_cast %22 : vector<8xf32> to vector<8x1xf32>
    %c0_7 = arith.constant 0 : index
    %c0_8 = arith.constant 0 : index
    %24 = vector.load %arg5[%c0_7, %c0_8] : memref<8x1xf32, #tpu.memory_space<vmem>>, vector<8x1xf32>
    %25 = arith.maximumf %24, %23 : vector<8x1xf32>
    %c0_9 = arith.constant 0 : index
    %c0_10 = arith.constant 0 : index
    %26 = vector.load %arg6[%c0_9, %c0_10] : memref<8x1xf32, #tpu.memory_space<vmem>>, vector<8x1xf32>
    %c0_11 = arith.constant 0 : index
    %c0_12 = arith.constant 0 : index
    %27 = vector.load %arg5[%c0_11, %c0_12] : memref<8x1xf32, #tpu.memory_space<vmem>>, vector<8x1xf32>
    %28 = arith.subf %27, %25 : vector<8x1xf32>
    %29 = math.exp %28 : vector<8x1xf32>
    %30 = arith.mulf %26, %29 : vector<8x1xf32>
    %31 = vector.broadcast %25 : vector<8x1xf32> to vector<8x128xf32>
    %32 = arith.subf %21, %31 : vector<8x128xf32>
    %33 = math.exp %32 : vector<8x128xf32>
    %cst_13 = arith.constant dense<0.000000e+00> : vector<8xf32>
    %34 = vector.multi_reduction <add>, %33, %cst_13 [1] : vector<8x128xf32> to vector<8xf32>
    %35 = vector.shape_cast %34 : vector<8xf32> to vector<8x1xf32>
    %36 = arith.addf %30, %35 : vector<8x1xf32>
    %c0_14 = arith.constant 0 : index
    %c0_15 = arith.constant 0 : index
    %37 = vector.load %arg6[%c0_14, %c0_15] : memref<8x1xf32, #tpu.memory_space<vmem>>, vector<8x1xf32>
    tpu.vector_store %arg6[%c0_14, %c0_15], %36 {strides = array<i32>} : memref<8x1xf32, #tpu.memory_space<vmem>>, vector<8x1xf32>,
    %c0_16 = arith.constant 0 : index
    %c0_17 = arith.constant 0 : index
    %38 = vector.load %arg5[%c0_16, %c0_17] : memref<8x1xf32, #tpu.memory_space<vmem>>, vector<8x1xf32>
    tpu.vector_store %arg5[%c0_16, %c0_17], %25 {strides = array<i32>} : memref<8x1xf32, #tpu.memory_space<vmem>>, vector<8x1xf32>,
    %c128_i32_18 = arith.constant 128 : i32
    %39 = arith.muli %arg1, %c128_i32_18 : i32
    %40 = vector.broadcast %39 : i32 to vector<8x1xi32>
    %41 = arith.subi %4, %40 : vector<8x1xi32>
    %c0_19 = arith.constant 0 : index
    %c0_20 = arith.constant 0 : index
    %42 = vector.load %arg7[%c0_19, %c0_20] : memref<8x1xf32, #tpu.memory_space<vmem>>, vector<8x1xf32>
    %43 = vector.broadcast %41 : vector<8x1xi32> to vector<8x128xi32>
    %44 = arith.cmpi eq, %5, %43 : vector<8x128xi32>
    %cst_21 = arith.constant 0.000000e+00 : f32
    %45 = vector.broadcast %cst_21 : f32 to vector<8x128xf32>
    %46 = arith.select %44, %21, %45 : vector<8x128xi1>, vector<8x128xf32>
    %cst_22 = arith.constant dense<0.000000e+00> : vector<8xf32>
    %47 = vector.multi_reduction <add>, %46, %cst_22 [1] : vector<8x128xf32> to vector<8xf32>
    %48 = vector.shape_cast %47 : vector<8xf32> to vector<8x1xf32>
    %49 = arith.addf %42, %48 : vector<8x1xf32>
    %c0_23 = arith.constant 0 : index
    %c0_24 = arith.constant 0 : index
    %50 = vector.load %arg7[%c0_23, %c0_24] : memref<8x1xf32, #tpu.memory_space<vmem>>, vector<8x1xf32>
    tpu.vector_store %arg7[%c0_23, %c0_24], %49 {strides = array<i32>} : memref<8x1xf32, #tpu.memory_space<vmem>>, vector<8x1xf32>,
    %c0_i32_25 = arith.constant 0 : i32
    %51 = arith.cmpi eq, %arg1, %c0_i32_25 : i32
    %52 = arith.extui %51 : i1 to i32
    %c0_i32_26 = arith.constant 0 : i32
    %53 = arith.cmpi ne, %52, %c0_i32_26 : i32
    scf.if %53 {
      %c0_27 = arith.constant 0 : index
      %c0_28 = arith.constant 0 : index
      %54 = vector.load %arg5[%c0_27, %c0_28] : memref<8x1xf32, #tpu.memory_space<vmem>>, vector<8x1xf32>
      %c0_29 = arith.constant 0 : index
      %c0_30 = arith.constant 0 : index
      %55 = vector.load %arg6[%c0_29, %c0_30] : memref<8x1xf32, #tpu.memory_space<vmem>>, vector<8x1xf32>
      %56 = math.log %55 : vector<8x1xf32>
      %57 = arith.addf %54, %56 : vector<8x1xf32>
      %c-100_i32 = arith.constant -100 : i32
      %58 = vector.broadcast %c-100_i32 : i32 to vector<8x1xi32>
      %59 = arith.cmpi ne, %4, %58 : vector<8x1xi32>
      %60 = arith.andi %11, %59 : vector<8x1xi1>
      %61 = arith.extui %60 : vector<8x1xi1> to vector<8x1xi32>
      %62 = arith.sitofp %61 : vector<8x1xi32> to vector<8x1xf32>
      %c0_31 = arith.constant 0 : index
      %c0_32 = arith.constant 0 : index
      %63 = vector.load %arg7[%c0_31, %c0_32] : memref<8x1xf32, #tpu.memory_space<vmem>>, vector<8x1xf32>
      %64 = arith.subf %57, %63 : vector<8x1xf32>
      %65 = arith.mulf %64, %62 : vector<8x1xf32>
      %66 = vector.shape_cast %65 : vector<8x1xf32> to vector<1x8x1xf32>
      %cst_33 = arith.constant dense<0.000000e+00> : vector<1xf32>
      %67 = vector.multi_reduction <add>, %66, %cst_33 [1, 2] : vector<1x8x1xf32> to vector<1xf32>
      %68 = vector.shape_cast %67 : vector<1xf32> to vector<1x1x1xf32>
      %69 = vector.extract %68[0, 0, 0] : f32 from vector<1x1x1xf32>
      %70 = vector.shape_cast %62 : vector<8x1xf32> to vector<1x8x1xf32>
      %cst_34 = arith.constant dense<0.000000e+00> : vector<1xf32>
      %71 = vector.multi_reduction <add>, %70, %cst_34 [1, 2] : vector<1x8x1xf32> to vector<1xf32>
      %72 = vector.shape_cast %71 : vector<1xf32> to vector<1x1x1xf32>
      %73 = vector.extract %72[0, 0, 0] : f32 from vector<1x1x1xf32>
      %74 = tpu.iota {dimensions = array<i32: 2>} : vector<1x1x128xi32>
      %c0_i32_35 = arith.constant 0 : i32
      %75 = vector.broadcast %c0_i32_35 : i32 to vector<1x1x128xi32>
      %76 = arith.cmpi eq, %74, %75 : vector<1x1x128xi32>
      %cst_36 = arith.constant 0.000000e+00 : f32
      %77 = vector.broadcast %69 : f32 to vector<1x1x128xf32>
      %78 = vector.broadcast %cst_36 : f32 to vector<1x1x128xf32>
      %79 = arith.select %76, %77, %78 : vector<1x1x128xi1>, vector<1x1x128xf32>
      %c1_i32 = arith.constant 1 : i32
      %80 = vector.broadcast %c1_i32 : i32 to vector<1x1x128xi32>
      %81 = arith.cmpi eq, %74, %80 : vector<1x1x128xi32>
      %cst_37 = arith.constant 0.000000e+00 : f32
      %82 = vector.broadcast %73 : f32 to vector<1x1x128xf32>
      %83 = vector.broadcast %cst_37 : f32 to vector<1x1x128xf32>
      %84 = arith.select %81, %82, %83 : vector<1x1x128xi1>, vector<1x1x128xf32>
      %85 = arith.addf %79, %84 : vector<1x1x128xf32>
      %c0_38 = arith.constant 0 : index
      %c0_39 = arith.constant 0 : index
      %c0_40 = arith.constant 0 : index
      %86 = vector.load %arg4[%c0_38, %c0_39, %c0_40] : memref<1x1x128xf32, #tpu.memory_space<vmem>>, vector<1x1x128xf32>
      tpu.vector_store %arg4[%c0_38, %c0_39, %c0_40], %85 {strides = array<i32>} : memref<1x1x128xf32, #tpu.memory_space<vmem>>, vector<1x1x128xf32>,
    } else {
    }
    return
  }
  func.func @transform_0(%arg0: i32, %arg1: i32) -> (i32, i32) {
    %c0_i32 = arith.constant 0 : i32
    return %arg0, %arg1 : i32, i32
  }
  func.func @transform_1(%arg0: i32, %arg1: i32) -> (i32, i32) {
    %c0_i32 = arith.constant 0 : i32
    %c0_i32_0 = arith.constant 0 : i32
    return %arg0, %c0_i32 : i32, i32
  }
  func.func @transform_2(%arg0: i32, %arg1: i32) -> (i32, i32, i32) {
    %c0_i32 = arith.constant 0 : i32
    %c0_i32_0 = arith.constant 0 : i32
    %c0_i32_1 = arith.constant 0 : i32
    return %arg0, %c0_i32, %c0_i32_0 : i32, i32, i32
  }
}

</mosaic_0001>

<bundles_post_ra>
// kernel: tpu_custom_call.1
= control target key start
LH: loop header
LB: loop body
LE: loop exit
PB: predicated region body
PF: predicated region fallthrough
CT: control target
= control target key end

     0   :  { %v22_v0 = vlaneseq  ;;  %s211_s0 = inlined_call_operand.vmem [shape: f32[8,4], index: 0, kind: input, shape index: {}]   ;;  %s212_s1 = inlined_call_operand.vmem [shape: s32[8,1], index: 1, kind: input, shape index: {}]   ;;  %s213_s2 = inlined_call_operand.hbm [shape: f32[1,1,128], index: 2, kind: output, shape index: {}]  }
   0x1   :  { %7 = vsyncpa [#allocation6], 0  ;;  %v20_v1 = vld [vmem:[%s211_s0] sm:$0xff]  ;;  %vm16_vm1 = vcmask 7168   ;;  %v169_v4 = vmov -1e+30  }
   0x2   :  { %v191_v2 = vand.u32 127, %v22_v0  ;;  %17 = vst.msk [vmem:[#allocation2] sm:$0xff] %vm16_vm1, %v169_v4  ;;  %v170_v5 = vmov 0   ;;  %v21_v6 = vld [vmem:[%s212_s1] sm:$0xff]  ;;  %v171_v7 = vmov 0.0   ;;  %s172_s13 = smov [#allocation5]  }
   0x3   :  { %139 = vset.pattern.permute.xlu0 %v170_v5  ;;  %140 = vset.pattern.permute.xlu1 %v170_v5  ;;  %18 = vst.msk [vmem:[#allocation3] sm:$0xff] %vm16_vm1, %v171_v7  ;;  %19 = vst.msk [vmem:[#allocation4] sm:$0xff] %vm16_vm1, %v171_v7  ;;  %vm81_vm3 = vcmp.ne.s32.totalorder %v21_v6, 4294967196  ;;  %s122_s14 = sshll.u32 %s172_s13, 4  ;;  %s123_s14 = int_to_ptr.vmem [resolvable:$true] %s122_s14 }
   0x4   :  { %vm33_vm0 = vcmp.lt.s32.totalorder %v191_v2, 4  ;;  %65 = vperm.xlu1 %140, %v21_v6   ;;  %v130_v18 = vsel %vm81_vm3, 1.0, %v171_v7  ;;  %vm108_vm4 = vcmp.eq.s32.totalorder %v191_v2, 0  ;;  %vm111_vm5 = vcmp.eq.s32.totalorder %v191_v2, 1  ;;  %s147_s15 = scalar_lea.vmem %s123_s14, 16  ;;  %s151_s16 = scalar_lea.vmem %s123_s14, 32 }
   0x5   :  { %v37_v3 = vsel %vm33_vm0, %v20_v1, -1e+30  ;;  %v98_v19 = vsel %vm16_vm1, %v130_v18, 0.0  ;;  %p148_p0 = scmp.ne.s32.totalorder %s123_s14, %s147_s15  ;;  %p152_p1 = scmp.lt.s32.totalorder %s123_s14, %s123_s14 }
   0x6   :  { %38 = vmax.xlane.f32.xlu0 %v37_v3  ;;  %p153_p2 = scmp.lt.s32.totalorder %s151_s16, %s147_s15 }
   0x8   :  { %p154_p3 = por %p153_p2, %p152_p1 }
   0x9   :  { %v40_v8 = vld [vmem:[#allocation2] sm:$0xff] }
   0xa   :  { %v42_v22 = vld [vmem:[#allocation3] sm:$0xff]  ;;  %v63_v26 = vld [vmem:[#allocation4] sm:$0xff]  ;;  %p155_p4 = pnand %p154_p3, %p148_p0 }
  0x7f   :  { %v66_v15 = vpop.permute.xlu1 %65 }
  0x80   :  { %vm67_vm2 = vcmp.eq.s32.totalorder %v191_v2, %v66_v15 }
  0x81   :  { %v68_v17 = vsel %vm67_vm2, %v37_v3, 0.0 }
  0x8f   :  { %v39_v9 = vpop.xlane.xlu0 %38 }
  0x90   :  { %v41_v10 = vmax.f32 %v40_v8, %v39_v9 }
  0x92   :  { %v43_v11 = vsub.f32 %v40_v8, %v41_v10  ;;  %60 = vst.msk [vmem:[#allocation2] sm:$0xff] %vm16_vm1, %v41_v10  ;;  %49 = vperm.xlu0 %139, %v41_v10  }
  0x94   :  { %v44_v20 = vmul.f32 1.442695, %v43_v11 }
  0x99   :  { %v76_v32 = vld [vmem:[#allocation2] sm:$0xff] }
  0xb1   :  { %99 = vadd.xlane.f32.xlu0 %v98_v19 }
 0x10d   :  { %v50_v12 = vpop.permute.xlu0 %49 }
 0x10e   :  { %v52_v13 = vsub.f32 %v37_v3, %v50_v12 }
 0x110   :  { %v53_v14 = vmul.f32 1.442695, %v52_v13 }
 0x112   :  { %141 = vpow2.f32 %v53_v14 }
 0x113   :  { %143 = vpow2.f32 %v44_v20 }
 0x11f   :  { %v142_v16 = vpop.eup %141 }
 0x120   :  { %55 = vadd.xlane.f32.xlu1 %v142_v16  ;;  %v144_v21 = vpop.eup %143 }
 0x121   :  { %v46_v23 = vmul.f32 %v144_v21, %v42_v22 }
 0x124   :  { %69 = vadd.xlane.f32.xlu1 %v68_v17 }
 0x13a   :  { %v100_v38 = vpop.xlane.xlu0 %99 }
 0x13b   :  { %v101_v39 = vrot.slane %v100_v38, 4 }
 0x13d   :  { %v102_v40 = vadd.f32 %v101_v39, %v100_v38 }
 0x13f   :  { %v103_v41 = vrot.slane %v102_v40, 2 }
 0x141   :  { %v104_v45 = vadd.f32 %v103_v41, %v102_v40 }
 0x143   :  { %v105_v48 = vrot.slane %v104_v45, 1 }
 0x145   :  { %v106_v51 = vadd.f32 %v105_v48, %v104_v45 }
 0x1a9   :  { %v56_v24 = vpop.xlane.xlu1 %55 }
 0x1aa   :  { %v57_v25 = vadd.f32 %v56_v24, %v46_v23 }
 0x1ac   :  { %59 = vst.msk [vmem:[#allocation3] sm:$0xff] %vm16_vm1, %v57_v25 }
 0x1ad   :  { %v70_v27 = vpop.xlane.xlu1 %69 }
 0x1ae   :  { %v71_v28 = vadd.f32 %v70_v27, %v63_v26 }
 0x1b0   :  { %72 = vst.msk [vmem:[#allocation4] sm:$0xff] %vm16_vm1, %v71_v28 }
 0x1b3   :  { %v77_v29 = vld [vmem:[#allocation3] sm:$0xff] }
 0x1b4   :  { %145 = vlog2.f32 %v77_v29 }
 0x1b7   :  { %v85_v33 = vld [vmem:[#allocation4] sm:$0xff] }
 0x1c1   :  { %v146_v30 = vpop.eup %145 }
 0x1c2   :  { %v79_v31 = vmul.f32 0.6931472, %v146_v30 }
 0x1c4   :  { %v80_v34 = vadd.f32 %v79_v31, %v76_v32 }
 0x1c6   :  { %v86_v35 = vsub.f32 %v80_v34, %v85_v33 }
 0x1c8   :  { %v87_v36 = vmul.f32 %v130_v18, %v86_v35 }
 0x1ca   :  { %v88_v37 = vsel %vm16_vm1, %v87_v36, 0.0 }
 0x1cb   :  { %89 = vadd.xlane.f32.xlu1 %v88_v37 }
 0x254   :  { %v90_v42 = vpop.xlane.xlu1 %89 }
 0x255   :  { %v91_v43 = vrot.slane %v90_v42, 4 }
 0x257   :  { %v92_v44 = vadd.f32 %v91_v43, %v90_v42 }
 0x259   :  { %v93_v46 = vrot.slane %v92_v44, 2 }
 0x25b   :  { %v94_v47 = vadd.f32 %v93_v46, %v92_v44 }
 0x25d   :  { %v95_v49 = vrot.slane %v94_v47, 1 }
 0x25f   :  { %v96_v50 = vadd.f32 %v95_v49, %v94_v47 }
 0x261   :  { %131 = vpush %v96_v50 }
 0x262   :  { %133 = vpush %v106_v51 }
 0x292   :  { %s132_s0 = spop %131 }
 0x293   :  { %v109_v52 = vstv %s132_s0  ;;  %s134_s1 = spop %133 }
 0x294   :  { %v110_v53 = vsel %vm108_vm4, %v109_v52, 0.0  ;;  %v112_v54 = vstv %s134_s1 }
 0x295   :  { %v113_v55 = vsel %vm111_vm5, %v112_v54, 0.0 }
 0x296   :  { %v114_v56 = vadd.f32 %v113_v55, %v110_v53 }
 0x298   :  { %115 = vst [vmem:[#allocation5] sm:$0x1] %v114_v56 }
 0x299   :  { %158 = shalt.err (!%p155_p4)
}
 0x29a   :  { %125 = dma.vmem_to_hbm [thread:$0]  %s123_s14, 16, %s213_s2, [#allocation6]  }
 0x29b   :  { %167 = dma.done.wait [#allocation6], 16  }
 0x29c   :  { %168 = vsyncadd [#allocation6], 4294967280 }
 0x29d   :  { %129 = vsyncpa [#allocation6], 1 }

</bundles_post_ra>
